<compile_context>
chip_gen: v7x
topology: tpu7x:2x2x1
jax: 0.10.0
libtpu: 0.0.40
codegen_flags: <defaults>
</compile_context>

<pallas_src>
import math
from functools import partial

import jax
import jax.numpy as jnp
from jax import lax
from jax.experimental import pallas as pl
from jax.experimental.pallas import tpu as pltpu


# ----------------------------------------------------------------------------
# tiling helper
# ----------------------------------------------------------------------------
def _pick_tile(n, target, align):
    """Largest t <= target with t % align == 0 and n % t == 0; else n (full)."""
    if n <= target:
        return n
    t = (min(target, n) // align) * align
    while t >= align:
        if n % t == 0:
            return t
        t -= align
    return n


# ----------------------------------------------------------------------------
# Tiled linear (matmul + optional bias), K-reduction with f32 accumulator
# ----------------------------------------------------------------------------
def _matmul_kernel(x_ref, w_ref, o_ref, acc_ref):
    @pl.when(pl.program_id(2) == 0)
    def _():
        acc_ref[...] = jnp.zeros(acc_ref.shape, jnp.float32)

    acc_ref[...] += jnp.dot(x_ref[...], w_ref[...],
                            preferred_element_type=jnp.float32)

    @pl.when(pl.program_id(2) == pl.num_programs(2) - 1)
    def _():
        o_ref[...] = acc_ref[...].astype(o_ref.dtype)


def _matmul_bias_kernel(x_ref, w_ref, b_ref, o_ref, acc_ref):
    @pl.when(pl.program_id(2) == 0)
    def _():
        acc_ref[...] = jnp.zeros(acc_ref.shape, jnp.float32)

    acc_ref[...] += jnp.dot(x_ref[...], w_ref[...],
                            preferred_element_type=jnp.float32)

    @pl.when(pl.program_id(2) == pl.num_programs(2) - 1)
    def _():
        o_ref[...] = (acc_ref[...]
                      + b_ref[...].astype(jnp.float32)).astype(o_ref.dtype)


def pallas_linear(x, w, b=None, *, tm=256, tn=256, tk=256):
    """y = x @ w (+ b).  x: (M, K), w: (K, N), b: (N,) or None."""
    M, K = x.shape
    _, N = w.shape
    tm = _pick_tile(M, tm, 8)     # sublane tile of x / out
    tn = _pick_tile(N, tn, 128)   # lane tile of w / out / bias
    tk = _pick_tile(K, tk, 128)   # lane tile of x, sublane tile of w
    grid = (M // tm, N // tn, K // tk)

    x_spec = pl.BlockSpec((tm, tk), lambda i, j, kk: (i, kk))
    w_spec = pl.BlockSpec((tk, tn), lambda i, j, kk: (kk, j))
    o_spec = pl.BlockSpec((tm, tn), lambda i, j, kk: (i, j))
    scratch = [pltpu.VMEM((tm, tn), jnp.float32)]
    cparams = pltpu.CompilerParams(
        dimension_semantics=("parallel", "parallel", "arbitrary"))
    itemsize = x.dtype.itemsize
    cost = pl.CostEstimate(
        flops=2 * M * N * K, transcendentals=0,
        bytes_accessed=(M * K + K * N + M * N) * itemsize)
    out_shape = jax.ShapeDtypeStruct((M, N), x.dtype)

    if b is None:
        return pl.pallas_call(
            _matmul_kernel, out_shape=out_shape, grid=grid,
            in_specs=[x_spec, w_spec], out_specs=o_spec,
            scratch_shapes=scratch, compiler_params=cparams,
            cost_estimate=cost,
        )(x, w)

    b2 = b.reshape(1, N)
    b_spec = pl.BlockSpec((1, tn), lambda i, j, kk: (0, j))
    return pl.pallas_call(
        _matmul_bias_kernel, out_shape=out_shape, grid=grid,
        in_specs=[x_spec, w_spec, b_spec], out_specs=o_spec,
        scratch_shapes=scratch, compiler_params=cparams,
        cost_estimate=cost,
    )(x, w, b2)


# ----------------------------------------------------------------------------
# Flash attention (online softmax) on (B, N, heads*dim_head) activations
# ----------------------------------------------------------------------------
def _flash_attn_kernel(q_ref, k_ref, v_ref, o_ref, m_ref, l_ref, acc_ref,
                       *, heads, scale):
    # q_ref: (1, tq, inner); k_ref/v_ref: (1, tk, inner); o_ref: (1, tq, inner)
    # m_ref/l_ref: (tq, heads) f32; acc_ref: (tq, inner) f32;  inner = heads*d
    ki = pl.program_id(2)

    @pl.when(ki == 0)
    def _init():
        m_ref[...] = jnp.full(m_ref.shape, -jnp.inf, jnp.float32)
        l_ref[...] = jnp.zeros(l_ref.shape, jnp.float32)
        acc_ref[...] = jnp.zeros(acc_ref.shape, jnp.float32)

    inner = q_ref.shape[-1]
    d = inner // heads

    # Fold the softmax scale into q (O(tq*inner) instead of O(tq*tk*heads));
    # keep matmul inputs in their native dtype (bf16 feeds the MXU directly).
    q = q_ref[0] * scale          # (tq, inner)
    k = k_ref[0]                  # (tk, inner)
    v = v_ref[0]                  # (tk, inner)

    for h in range(heads):        # static unroll over heads
        hs = slice(h * d, (h + 1) * d)
        qh = q[:, hs]             # (tq, d)
        kh = k[:, hs]             # (tk, d)
        vh = v[:, hs]             # (tk, d)

        # q @ k^T without materializing a transpose: contract the last dims.
        s = lax.dot_general(qh, kh, (((1,), (1,)), ((), ())),
                            preferred_element_type=jnp.float32)   # (tq, tk)

        m_prev = m_ref[:, h:h + 1]                                 # (tq, 1)
        m_new = jnp.maximum(m_prev, jnp.max(s, axis=-1, keepdims=True))
        alpha = jnp.exp(m_prev - m_new)                            # (tq, 1)
        p = jnp.exp(s - m_new)                                     # (tq, tk)

        l_ref[:, h:h + 1] = alpha * l_ref[:, h:h + 1] + jnp.sum(
            p, axis=-1, keepdims=True)
        acc_ref[:, hs] = alpha * acc_ref[:, hs] + jnp.dot(
            p.astype(vh.dtype), vh, preferred_element_type=jnp.float32)
        m_ref[:, h:h + 1] = m_new

    @pl.when(ki == pl.num_programs(2) - 1)
    def _finalize():
        inv = pl.reciprocal(l_ref[...], approx=True)               # (tq, heads)
        for h in range(heads):
            hs = slice(h * d, (h + 1) * d)
            acc_ref[:, hs] = acc_ref[:, hs] * inv[:, h:h + 1]
        # One lane-dense store of the full (tq, heads*d) slab.
        o_ref[0] = acc_ref[...].astype(o_ref.dtype)


def pallas_flash_attention(q_src, k_src, v_src, cols, *, heads, dim_head,
                           block_q=128, block_kv=256):
    """softmax(q k^T / sqrt(d)) v, on (B, N, heads*dim_head) activations.

    q_src/k_src/v_src may be the same fused projection output; `cols` gives the
    block-column of each of q/k/v along the last dim, selected by the
    index_map (zero-copy un-fusing of the QKV projection).
    """
    B, Nq = q_src.shape[0], q_src.shape[1]
    Nk = k_src.shape[1]
    inner = heads * dim_head
    tq = _pick_tile(Nq, block_q, 8)
    tk = _pick_tile(Nk, block_kv, 8)
    grid = (B, Nq // tq, Nk // tk)
    scale = 1.0 / math.sqrt(dim_head)
    qc, kc, vc = cols

    def make_in_map(col, kv_side):
        if kv_side:
            return lambda b, qi, ki: (b, ki, col)
        return lambda b, qi, ki: (b, qi, col)

    itemsize = q_src.dtype.itemsize
    cost = pl.CostEstimate(
        flops=4 * B * heads * Nq * Nk * dim_head,
        transcendentals=B * heads * Nq * Nk,
        bytes_accessed=(2 * B * Nq * inner + 2 * B * Nk * inner) * itemsize)

    return pl.pallas_call(
        partial(_flash_attn_kernel, heads=heads, scale=scale),
        out_shape=jax.ShapeDtypeStruct((B, Nq, inner), q_src.dtype),
        grid=grid,
        in_specs=[
            pl.BlockSpec((1, tq, inner), make_in_map(qc, False)),
            pl.BlockSpec((1, tk, inner), make_in_map(kc, True)),
            pl.BlockSpec((1, tk, inner), make_in_map(vc, True)),
        ],
        out_specs=pl.BlockSpec((1, tq, inner), lambda b, qi, ki: (b, qi, 0)),
        scratch_shapes=[
            pltpu.VMEM((tq, heads), jnp.float32),   # running max (per head)
            pltpu.VMEM((tq, heads), jnp.float32),   # running softmax denom
            pltpu.VMEM((tq, inner), jnp.float32),   # f32 output accumulator
        ],
        compiler_params=pltpu.CompilerParams(
            dimension_semantics=("parallel", "parallel", "arbitrary")),
        cost_estimate=cost,
    )(q_src, k_src, v_src)


# ----------------------------------------------------------------------------
# Module: parameters + forward
# ----------------------------------------------------------------------------
def init_params(key, query_dim, context_dim, heads, dim_head, dtype=jnp.float32):
    inner_dim = heads * dim_head
    k1, k2, k3, k4, k5 = jax.random.split(key, 5)

    # PyTorch nn.Linear stores weight as (out, in); we pre-transpose to (in, out).
    def lin_init(k, fan_in, fan_out):
        bound = 1.0 / math.sqrt(fan_in)
        return jax.random.uniform(k, (fan_in, fan_out), dtype, -bound, bound)

    return {
        "wq": lin_init(k1, query_dim, inner_dim),
        "wk": lin_init(k2, context_dim, inner_dim),
        "wv": lin_init(k3, context_dim, inner_dim),
        "wo": lin_init(k4, inner_dim, query_dim),
        "bo": jax.random.uniform(k5, (query_dim,), dtype,
                                 -1.0 / math.sqrt(inner_dim),
                                 1.0 / math.sqrt(inner_dim)),
    }


def memory_efficient_cross_attention(params, x, context=None, *, heads, dim_head,
                                     block_q=128, block_kv=256):
    """Forward pass matching MemoryEfficientCrossAttention (dropout=0, no mask)."""
    # TODO(synk): mask / additional_tokens / n_times_crossframe_attn_in_self branches (module defaults None/None/0) are not implemented.
    B, Nq, Cq = x.shape
    inner = heads * dim_head
    lane_ok = (inner % 128 == 0)   # can slice q/k/v columns straight from fused proj

    if context is None:
        # Self-attention: one fused QKV projection (activations read once).
        w_qkv = jnp.concatenate([params["wq"], params["wk"], params["wv"]], axis=1)
        qkv = pallas_linear(x.reshape(B * Nq, Cq), w_qkv).reshape(B, Nq, 3 * inner)
        if lane_ok:
            q_src, k_src, v_src = qkv, qkv, qkv
            cols = (0, 1, 2)
        else:
            q_src = qkv[..., :inner]
            k_src = qkv[..., inner:2 * inner]
            v_src = qkv[..., 2 * inner:]
            cols = (0, 0, 0)
    else:
        Nk, Ck = context.shape[1], context.shape[2]
        q_src = pallas_linear(x.reshape(B * Nq, Cq), params["wq"]).reshape(B, Nq, inner)
        w_kv = jnp.concatenate([params["wk"], params["wv"]], axis=1)
        kv = pallas_linear(context.reshape(B * Nk, Ck), w_kv).reshape(B, Nk, 2 * inner)
        if lane_ok:
            k_src, v_src = kv, kv
            cols = (0, 0, 1)
        else:
            k_src = kv[..., :inner]
            v_src = kv[..., inner:]
            cols = (0, 0, 0)

    # Flash attention directly on the (B, N, heads*dim_head) layout.
    out = pallas_flash_attention(q_src, k_src, v_src, cols,
                                 heads=heads, dim_head=dim_head,
                                 block_q=block_q, block_kv=block_kv)

    # Output projection (Linear with bias; Dropout(0.0) is identity).
    out = pallas_linear(out.reshape(B * Nq, inner), params["wo"], params["bo"])
    return out.reshape(B, Nq, Cq)


# ----------------------------------------------------------------------------
# Reference (pure JAX) for correctness checks
# ----------------------------------------------------------------------------
def reference_forward(params, x, context=None, *, heads, dim_head):
    B, Nq, _ = x.shape
    ctx = x if context is None else context
    Nk = ctx.shape[1]
    inner = heads * dim_head
    q = x @ params["wq"]
    k = ctx @ params["wk"]
    v = ctx @ params["wv"]
    q = q.reshape(B, Nq, heads, dim_head).transpose(0, 2, 1, 3)
    k = k.reshape(B, Nk, heads, dim_head).transpose(0, 2, 1, 3)
    v = v.reshape(B, Nk, heads, dim_head).transpose(0, 2, 1, 3)
    s = jnp.einsum("bhqd,bhkd->bhqk", q, k) / math.sqrt(dim_head)
    p = jax.nn.softmax(s, axis=-1)
    o = jnp.einsum("bhqk,bhkd->bhqd", p, v)
    o = o.transpose(0, 2, 1, 3).reshape(B, Nq, inner)
    return o @ params["wo"] + params["bo"]


if __name__ == "__main__":
    key = jax.random.PRNGKey(0)
    kx, kp, krest = jax.random.split(key, 3)

    # --- Test 1: self-attention (fused QKV path, lane-aligned inner dim) ----
    B, N, query_dim = 2, 16, 64
    heads, dim_head = 4, 32          # inner_dim = 128
    x = jax.random.normal(kx, (B, N, query_dim), jnp.float32)
    params = init_params(kp, query_dim, query_dim, heads, dim_head)

    out = memory_efficient_cross_attention(
        params, x, context=None, heads=heads, dim_head=dim_head)
    out = jax.block_until_ready(out)
    ref = reference_forward(params, x, None, heads=heads, dim_head=dim_head)
    assert out.shape == (B, N, query_dim)
    assert jnp.allclose(out, ref, atol=2e-3, rtol=2e-3), "self-attn mismatch"

    # --- Test 2: cross-attention, small blocks -> multiple q/kv tiles -------
    Nk, context_dim = 32, 48
    kp2, kc2 = jax.random.split(krest)
    params2 = init_params(kp2, query_dim, context_dim, heads, dim_head)
    ctx = jax.random.normal(kc2, (B, Nk, context_dim), jnp.float32)

    out2 = memory_efficient_cross_attention(
        params2, x, context=ctx, heads=heads, dim_head=dim_head,
        block_q=8, block_kv=8)       # exercise the online-softmax accumulation
    out2 = jax.block_until_ready(out2)
    ref2 = reference_forward(params2, x, ctx, heads=heads, dim_head=dim_head)
    assert out2.shape == (B, N, query_dim)
    assert jnp.allclose(out2, ref2, atol=2e-3, rtol=2e-3), "cross-attn mismatch"

    print("KERNEL_OK")
</pallas_src>

<mosaic_0001>
module attributes {stable_mosaic.version = 11 : i64} {
  func.func @_matmul_kernel(%arg0: i32, %arg1: i32, %arg2: i32, %arg3: memref<32x64xf32, #tpu.memory_space<vmem>>, %arg4: memref<64x128xf32, #tpu.memory_space<vmem>>, %arg5: memref<32x128xf32, #tpu.memory_space<vmem>>, %arg6: memref<32x128xf32, #tpu.memory_space<vmem>>) attributes {dimension_semantics = [#tpu.dimension_semantics<parallel>, #tpu.dimension_semantics<parallel>, #tpu.dimension_semantics<arbitrary>], iteration_bounds = array<i64: 1, 3, 1>, scalar_prefetch = 0 : i64, scratch_operands = 1 : i64, tpu.core_type = #tpu.core_type<tc>, window_params = [{transform_indices = @transform_0, window_bounds = array<i64: 32, 64>}, {transform_indices = @transform_1, window_bounds = array<i64: 64, 128>}, {transform_indices = @transform_2, window_bounds = array<i64: 32, 128>}]} {
    %c0_i32 = arith.constant 0 : i32
    %0 = arith.cmpi eq, %arg2, %c0_i32 : i32
    %1 = arith.extui %0 : i1 to i32
    %c0_i32_0 = arith.constant 0 : i32
    %2 = arith.cmpi ne, %1, %c0_i32_0 : i32
    scf.if %2 {
      %cst_10 = arith.constant 0.000000e+00 : f32
      %12 = vector.broadcast %cst_10 : f32 to vector<32x128xf32>
      %c0_11 = arith.constant 0 : index
      %c0_12 = arith.constant 0 : index
      %13 = vector.load %arg6[%c0_11, %c0_12] : memref<32x128xf32, #tpu.memory_space<vmem>>, vector<32x128xf32>
      tpu.vector_store %arg6[%c0_11, %c0_12], %12 {strides = array<i32>} : memref<32x128xf32, #tpu.memory_space<vmem>>, vector<32x128xf32>,
    } else {
    }
    %c0 = arith.constant 0 : index
    %c0_1 = arith.constant 0 : index
    %3 = vector.load %arg6[%c0, %c0_1] : memref<32x128xf32, #tpu.memory_space<vmem>>, vector<32x128xf32>
    %c0_2 = arith.constant 0 : index
    %c0_3 = arith.constant 0 : index
    %4 = vector.load %arg3[%c0_2, %c0_3] : memref<32x64xf32, #tpu.memory_space<vmem>>, vector<32x64xf32>
    %c0_4 = arith.constant 0 : index
    %c0_5 = arith.constant 0 : index
    %5 = vector.load %arg4[%c0_4, %c0_5] : memref<64x128xf32, #tpu.memory_space<vmem>>, vector<64x128xf32>
    %cst = arith.constant dense<0.000000e+00> : vector<32x128xf32>
    %6 = tpu.matmul %4, %5, %cst {dimension_numbers = #tpu.dot_dimension_numbers<[1], [0], [0], [1], [0, 0, 1, 1], [], []>} : vector<32x64xf32>, vector<64x128xf32>, vector<32x128xf32> -> vector<32x128xf32>
    %7 = arith.addf %3, %6 : vector<32x128xf32>
    %c0_6 = arith.constant 0 : index
    %c0_7 = arith.constant 0 : index
    %8 = vector.load %arg6[%c0_6, %c0_7] : memref<32x128xf32, #tpu.memory_space<vmem>>, vector<32x128xf32>
    tpu.vector_store %arg6[%c0_6, %c0_7], %7 {strides = array<i32>} : memref<32x128xf32, #tpu.memory_space<vmem>>, vector<32x128xf32>,
    %c0_i32_8 = arith.constant 0 : i32
    %9 = arith.cmpi eq, %arg2, %c0_i32_8 : i32
    %10 = arith.extui %9 : i1 to i32
    %c0_i32_9 = arith.constant 0 : i32
    %11 = arith.cmpi ne, %10, %c0_i32_9 : i32
    scf.if %11 {
      %c0_10 = arith.constant 0 : index
      %c0_11 = arith.constant 0 : index
      %12 = vector.load %arg6[%c0_10, %c0_11] : memref<32x128xf32, #tpu.memory_space<vmem>>, vector<32x128xf32>
      %c0_12 = arith.constant 0 : index
      %c0_13 = arith.constant 0 : index
      %13 = vector.load %arg5[%c0_12, %c0_13] : memref<32x128xf32, #tpu.memory_space<vmem>>, vector<32x128xf32>
      tpu.vector_store %arg5[%c0_12, %c0_13], %12 {strides = array<i32>} : memref<32x128xf32, #tpu.memory_space<vmem>>, vector<32x128xf32>,
    } else {
    }
    return
  }
  func.func @transform_0(%arg0: i32, %arg1: i32, %arg2: i32) -> (i32, i32) {
    %c0_i32 = arith.constant 0 : i32
    return %arg0, %arg2 : i32, i32
  }
  func.func @transform_1(%arg0: i32, %arg1: i32, %arg2: i32) -> (i32, i32) {
    %c0_i32 = arith.constant 0 : i32
    return %arg2, %arg1 : i32, i32
  }
  func.func @transform_2(%arg0: i32, %arg1: i32, %arg2: i32) -> (i32, i32) {
    %c0_i32 = arith.constant 0 : i32
    return %arg0, %arg1 : i32, i32
  }
}

</mosaic_0001>

<bundles_post_ra>
// kernel: tpu_custom_call.1
= control target key start
LH: loop header
LB: loop body
LE: loop exit
PB: predicated region body
PF: predicated region fallthrough
CT: control target
= control target key end

     0   :  { %7 = vsyncpa [#allocation4], 0  ;;  %s1024_s0 = inlined_call_operand.hbm [shape: f32[32,64], index: 0, kind: input, shape index: {}]   ;;  %s1025_s1 = inlined_call_operand.hbm [shape: f32[64,384], index: 1, kind: input, shape index: {}]   ;;  %s1026_s2 = inlined_call_operand.hbm [shape: f32[32,384], index: 2, kind: output, shape index: {}]  }
   0x1   :  { %8 = vsyncpa [#allocation7], 0 }
   0x2   :  { %10 = vsyncpa [#allocation7 + $0x1], 0 }
   0x3   :  { %11 = vsyncpa [#allocation5], 0 }
   0x4   :  { %13 = vsyncpa [#allocation5 + $0x1], 0  ;;  %s803_s9 = smov 0   ;;  %s805_s10 = smov 0  }
   0x5   :  { %s807_s11 = smov 0   ;;  %s809_s12 = smov 0  }
   0x6   :  { %s811_s13 = smov 0   ;;  %s813_s14 = smov 0  }
   0x7 LB: > { %s477_s15 = sadd.s32 4294967295, %s777_s14   ;;  %s478_s16 = sadd.s32 4294967294, %s777_s14   ;;  %s777_s14 = sphi %s813_s14, %s19_s14   ;;  %s773_s13 = sphi %s811_s13, %s1051_s13   ;;  %s769_s12 = sphi %s809_s12, %s1050_s12   ;;  %s765_s11 = sphi %s807_s11, %s1049_s11   ;;  %s761_s10 = sphi %s805_s10, %s1048_s10   ;;  %s757_s9 = sphi %s803_s9, %s1047_s9  }
   0x8   : > { %p82_p0 = scmp.ne.s32.totalorder %s765_s11, %s761_s10  ;;  %p83_p1 = scmp.eq.s32.totalorder %s777_s14, 0 }
   0x9   : > { %p88_p2 = scmp.ne.s32.totalorder %s761_s10, %s757_s9  ;;  %p840_p3 = scmp.eq.s32.totalorder %s477_s15, 0 }
   0xa   : > { %p844_p4 = por %p83_p1, %p82_p0  ;;  %p114_p5 = scmp.eq.s32.totalorder %s477_s15, 2 }
   0xb   : > { %s1033_s17 = scalar_select %p840_p3, 1, 0 }
   0xc   : > { %p850_p6 = por %p840_p3, %p88_p2  ;;  %p120_p7 = scmp.eq.s32.totalorder %s478_s16, 2 }
   0xd   : > { %p854_p8 = por %p114_p5, %p82_p0  ;;  %p479_p9 = scmp.ge.s32.totalorder %s777_s14, 1 }
   0xe   : > { %s1035_s19 = scalar_select %p850_p6, 1, 0 }
   0xf   : > { %s1036_s20 = scalar_select %p854_p8, 1, 0 }
  0x10   : > { %p859_p10 = por %p120_p7, %p88_p2  ;;  %p127_p11 = scmp.lt.s32.totalorder %s777_s14, 4 }
  0x11   : > { %s779_s23 = smov [#allocation3]   ;;  %p575_p0 = scmp.lt.s32.totalorder %s777_s14, 3 }
  0x12   : > { %s1037_s21 = scalar_select %p859_p10, 1, 0 }
  0x13   : > { %p864_p12 = pnand %p479_p9, %p127_p11  ;;  %s143_s24 = sshll.u32 %s779_s23, 4  ;;  %s144_s24 = int_to_ptr.vmem [resolvable:$true] %s143_s24 }
  0x14   : > { %p879_p2 = pnand %p575_p0, %p844_p4  ;;  %s34_s27 = sadd.s32 1, %s773_s13 }
  0x15   : > { %s1038_s22 = scalar_select %p864_p12, 1, 0 }
  0x16   : > { %p562_p13 = pneg %p864_p12  ;;  %s633_s30 = scalar_lea.hbm %s1024_s0, 512 }
  0x17   : > { %s1040_s26 = scalar_select %p879_p2, 1, 0 }
  0x18   : > { %p873_p1 = pnand %p562_p13, %p840_p3  ;;  %p634_p5 = scmp.ne.s32.totalorder %s1024_s0, %s633_s30 }
  0x19   : > { %p640_p4 = scmp.lt.u32.totalorder %s633_s30, %s1024_s0 }
  0x1a   : > { %p635_p7 = pneg %p873_p1 }
  0x1c   : > { %p636_p9 = pnand %p635_p7, %p634_p5 }
  0x1e   : > { %p637_p11 = pneg %p636_p9 }
  0x20   : > { %p642_p13 = pnand %p640_p4, %p637_p11 }
  0x22   : > { %645 = shalt.err (!%p642_p13)
}
  0x23   : > { %s646_s7 = scalar_lea.vmem %s144_s24, 512  ;;  %p654_p6 = scmp.lt.s32.totalorder %s144_s24, %s144_s24 }
  0x24   : > { %p647_p0 = scmp.ne.s32.totalorder %s144_s24, %s646_s7  ;;  %p655_p3 = scmp.lt.s32.totalorder %s646_s7, %s646_s7 }
  0x26   : > { %p649_p10 = pnand %p647_p0, %p635_p7  ;;  %p656_p12 = por %p655_p3, %p654_p6 }
  0x28   : > { %p650_p8 = pneg %p649_p10 }
  0x2a   : > { %p657_p2 = pnand %p656_p12, %p650_p8 }
  0x2c   : > { %660 = shalt.err (!%p657_p2)
}
  0x2d   : > { %s780_s8 = smov 128   ;;  %s781_s15 = smov 8  }
  0x2e   : > { %565 = dma.hbm_to_vmem [thread:$0]  (!%p873_p1), %s1024_s0, 512, %s144_s24, [#allocation4], %s780_s8, %s780_s8, %s781_s15  }
  0x2f   : > { %p36_p10 = scmp.ge.s32.totalorder %s34_s27, 3  ;;  %s75_s23 = sadd.s32 1, %s765_s11 }
  0x30   : > { %s157_s28 = sand.u32 1, %s765_s11   ;;  %s483_s3 = sshll.u32 %s773_s13, 7 }
  0x31   : > { %s1053_s27 = smov (%p36_p10, %s34_s27), 0  ;;  %s482_s29 = sshll.u32 %s157_s28, 6 }
  0x32   : > { %s71_s30 = ssub.s32 %s773_s13, %s1053_s27  ;;  %s913_s5 = scalar_lea.hbm %s1025_s1, %s483_s3 }
  0x33   : > { %p73_p3 = scmp.eq.s32.totalorder %s71_s30, 0  ;;  %s161_s24 = scalar_lea.vmem [#allocation6], %s482_s29 }
  0x34   : > { %s170_s6 = sshll.u32 %s161_s24, 4  ;;  %s920_s16 = scalar_lea.sflag [#allocation7], %s157_s28  ;;  %s918_s6 = int_to_ptr.vmem [resolvable:$true] %s170_s6 }
  0x35   : > { %s916_s7 = scalar_select %p73_p3, %s765_s11, %s75_s23  }
  0x36   : > { %s661_s18 = scalar_lea.hbm %s913_s5, 1024  ;;  %p1041_p8 = scmp.ne.s32.totalorder %s1040_s26, 0 }
  0x37   : > { %p662_p6 = scmp.ne.s32.totalorder %s913_s5, %s661_s18  ;;  %s666_s25 = scalar_lea.hbm %s1025_s1, 3072 }
  0x38   : > { %p663_p12 = pneg %p1041_p8  ;;  %p667_p5 = scmp.lt.u32.totalorder %s913_s5, %s1025_s1 }
  0x39   : > { %p668_p7 = scmp.lt.u32.totalorder %s666_s25, %s661_s18  ;;  %p670_p11 = scmp.lt.u32.totalorder %s661_s18, %s913_s5 }
  0x3a   : > { %p664_p1 = pnand %p663_p12, %p662_p6 }
  0x3b   : > { %p669_p9 = por %p668_p7, %p667_p5 }
  0x3c   : > { %p665_p2 = pneg %p664_p1 }
  0x3d   : > { %p671_p4 = por %p670_p11, %p669_p9 }
  0x3f   : > { %p672_p13 = pnand %p671_p4, %p665_p2 }
  0x41   : > { %675 = shalt.err (!%p672_p13)
}
  0x42   : > { %s676_s23 = scalar_lea.vmem %s918_s6, 1024  ;;  %s782_s28 = smov [#allocation6]  }
  0x43   : > { %p677_p0 = scmp.ne.s32.totalorder %s918_s6, %s676_s23  ;;  %s681_s24 = sshll.u32 %s782_s28, 4  ;;  %s682_s24 = int_to_ptr.vmem [resolvable:$false] %s681_s24 }
  0x44   : > { %s683_s30 = scalar_lea.vmem %s682_s24, 2048  ;;  %p684_p6 = scmp.lt.s32.totalorder %s918_s6, %s682_s24 }
  0x45   : > { %p679_p10 = pnand %p677_p0, %p663_p12  ;;  %p685_p1 = scmp.lt.s32.totalorder %s683_s30, %s676_s23 }
  0x47   : > { %p680_p3 = pneg %p679_p10  ;;  %p686_p5 = por %p685_p1, %p684_p6 }
  0x49   : > { %p687_p7 = pnand %p686_p5, %p680_p3 }
  0x4b   : > { %690 = shalt.err (!%p687_p7)
}
  0x4c   : > { %s783_s18 = smov 384   ;;  %p1042_p12 = scmp.ne.s32.totalorder %s1038_s22, 0 }
  0x4d   : > { %569 = dma.hbm_to_vmem [thread:$0]  (!%p1041_p8), %s913_s5, 1024, %s918_s6, %s920_s16, %s783_s18, %s780_s8, %s781_s15  }
  0x4e   : > { %182 = sbr.rel (%p1042_p12) target bundleno = 338 (0x152), region = 28  ;;  %p1043_p2 = scmp.ne.s32.totalorder (!%p1042_p12), %s1033_s17, 0 }
  0x55   : > { %744 = dma.done.wait (%p1043_p2), [#allocation4], 512  }
  0x56   : > { %746 = vsyncadd (%p1043_p2), [#allocation4], 4294966784  ;;  %s957_s3 = sand.u32 1, %s761_s10   ;;  %p1044_p9 = scmp.ne.s32.totalorder %s1035_s19, 0 }
  0x57   : > { %s486_s26 = sshll.u32 %s957_s3, 6  ;;  %s189_s25 = scalar_lea.sflag [#allocation7], %s957_s3 }
  0x58   : > { %s192_s29 = scalar_lea.vmem [#allocation6], %s486_s26 }
  0x59   : > { %748 = dma.done.wait (%p1044_p9), %s189_s25, 1024  }
  0x5a   : > { %750 = vsyncadd (%p1044_p9), %s189_s25, 4294966272  ;;  %v232_v0 = vld [vmem:[%s192_s29] sm:$0xff]  ;;  %v233_v1 = vld [vmem:[%s192_s29 + $0x8] sm:$0xff]  ;;  %vm240_vm0 = vcmask 523264   ;;  %s487_s17 = sshll.u32 %s957_s3, 5  ;;  %s493_s8 = sshll.u32 %s769_s12, 7 }
  0x5b   : > { %v234_v2 = vld [vmem:[%s192_s29 + $0x10] sm:$0xff]  ;;  %v530_v3 = vpack.c.bf16 %v233_v1, %v232_v0  ;;  %v235_v4 = vld [vmem:[%s192_s29 + $0x18] sm:$0xff]  ;;  %v236_v6 = vld [vmem:[%s192_s29 + $0x20] sm:$0xff]  ;;  %s212_s19 = scalar_lea.vmem [#allocation8], %s487_s17  ;;  %s976_s6 = scalar_lea.hbm %s1026_s2, %s493_s8 }
  0x5c   : > { %v534_v5 = vpack.c.bf16 %v235_v4, %v234_v2  ;;  %v237_v7 = vld [vmem:[%s192_s29 + $0x28] sm:$0xff]  ;;  %v228_v8 = vld [vmem:[#allocation3] sm:$0xff]  ;;  %v230_v9 = vld [vmem:[#allocation3 + $0x10] sm:$0xff]  ;;  %s373_s22 = sshll.u32 %s212_s19, 4  ;;  %s358_s16 = scalar_lea.sflag [#allocation5], %s957_s3  ;;  %s971_s22 = int_to_ptr.vmem [resolvable:$true] %s373_s22 }
  0x5d   : > { %531 = vmatprep.subr.bf16.mxu0 %v530_v3  ;;  %546 = vmatprep.subr.bf16.mxu1 %v530_v3  ;;  %v538_v10 = vpack.c.bf16 %v237_v7, %v236_v6  ;;  %v238_v11 = vld [vmem:[%s192_s29 + $0x30] sm:$0xff]  ;;  %v239_v12 = vld [vmem:[%s192_s29 + $0x38] sm:$0xff]  ;;  %v229_v14 = vld [vmem:[#allocation3 + $0x8] sm:$0xff]  ;;  %s691_s12 = scalar_lea.vmem %s971_s22, 512  ;;  %p1045_p11 = scmp.ne.s32.totalorder %s1036_s20, 0 }
  0x5e   : > { %533 = vmatpush3.bf16.msra.mxu0 %v530_v3  ;;  %550 = vmatpush3.bf16.msra.mxu1 %v530_v3  ;;  %v542_v13 = vpack.c.bf16 %v239_v12, %v238_v11  ;;  %v231_v15 = vld [vmem:[#allocation3 + $0x18] sm:$0xff]  ;;  %p692_p8 = scmp.ne.s32.totalorder %s971_s22, %s691_s12  ;;  %s784_s4 = smov [#allocation8]  }
  0x5f   : > { %535 = vmatprep.subr.bf16.mxu0 %v534_v5  ;;  %547 = vmatprep.subr.bf16.mxu1 %v534_v5  ;;  %s695_s23 = sshll.u32 %s784_s4, 4  ;;  %s696_s23 = int_to_ptr.vmem [resolvable:$false] %s695_s23 }
  0x60   : > { %524 = vmatprep.mubr.msk.f32.mxu0 %vm240_vm0, %v228_v8  ;;  %527 = vmatprep.mubr.msk.f32.mxu1 %vm240_vm0, %v230_v9  ;;  %p693_p4 = pnand %p692_p8, %p1045_p11  ;;  %s697_s28 = scalar_lea.vmem %s696_s23, 1024 }
  0x61   : > { %p698_p0 = scmp.lt.s32.totalorder %s971_s22, %s696_s23  ;;  %p699_p10 = scmp.lt.s32.totalorder %s697_s28, %s691_s12 }
  0x62   : > { %537 = vmatpush3.bf16.msra.mxu0 %v534_v5  ;;  %551 = vmatpush3.bf16.msra.mxu1 %v534_v5  ;;  %p694_p13 = pneg %p693_p4 }
  0x63   : > { %539 = vmatprep.subr.bf16.mxu0 %v538_v10  ;;  %548 = vmatprep.subr.bf16.mxu1 %v538_v10  ;;  %p700_p3 = por %p699_p10, %p698_p0 }
  0x65   : > { %p701_p6 = pnand %p700_p3, %p694_p13 }
  0x66   : > { %541 = vmatpush3.bf16.msra.mxu0 %v538_v10  ;;  %552 = vmatpush3.bf16.msra.mxu1 %v538_v10 }
  0x67   : > { %543 = vmatprep.subr.bf16.mxu0 %v542_v13  ;;  %549 = vmatprep.subr.bf16.mxu1 %v542_v13 }
  0x6a   : > { %545 = vmatpush3.bf16.msra.mxu0 %v542_v13  ;;  %553 = vmatpush3.bf16.msra.mxu1 %v542_v13 }
  0x6d   : > { %525 = vmatmul.mubr.msk.f32.vlgmr.msra.gmra.mrb[0].mxu0 %vm240_vm0, %v229_v14  ;;  %528 = vmatmul.mubr.msk.f32.vlgmr.msra.gmra.mrb[0].mxu1 %vm240_vm0, %v231_v15 }
 0x140   : > { %v526_v16 = vpop.f32.mrb[0].mxu0  ;;  %v529_v17 = vpop.f32.mrb[0].mxu1 }
 0x141   : > { %354 = vst [vmem:[%s212_s19 + $0x8] sm:$0xff] %v526_v16  ;;  %356 = vst [vmem:[%s212_s19 + $0x18] sm:$0xff] %v529_v17  ;;  %v319_v18 = vpop.f32.mrb[1].mxu0  ;;  %v329_v19 = vpop.f32.mrb[1].mxu1 }
 0x142   : > { %353 = vst [vmem:[%s212_s19] sm:$0xff] %v319_v18  ;;  %355 = vst [vmem:[%s212_s19 + $0x10] sm:$0xff] %v329_v19 }
 0x143   : > { %704 = shalt.err (!%p701_p6)
}
 0x144   : > { %s705_s24 = scalar_lea.hbm %s976_s6, 512  ;;  %s709_s26 = scalar_lea.hbm %s1026_s2, 1536 }
 0x145   : > { %p706_p1 = scmp.ne.s32.totalorder %s976_s6, %s705_s24  ;;  %p710_p12 = scmp.lt.u32.totalorder %s976_s6, %s1026_s2 }
 0x146   : > { %p711_p2 = scmp.lt.u32.totalorder %s709_s26, %s705_s24  ;;  %p713_p8 = scmp.lt.u32.totalorder %s705_s24, %s976_s6 }
 0x147   : > { %p707_p5 = pnand %p706_p1, %p1045_p11 }
 0x148   : > { %p712_p9 = por %p711_p2, %p710_p12 }
 0x149   : > { %p708_p7 = pneg %p707_p5 }
 0x14a   : > { %p714_p4 = por %p713_p8, %p712_p9 }
 0x14c   : > { %p715_p13 = pnand %p714_p4, %p708_p7 }
 0x14e   : > { %718 = shalt.err (!%p715_p13)
}
 0x14f   : > { %s785_s17 = smov 128   ;;  %s786_s19 = smov 384  }
 0x150   : > { %s787_s8 = smov 8  }
 0x151   : > { %560 = dma.vmem_to_hbm [thread:$0]  (%p1045_p11), %s971_s22, 512, %s976_s6, %s358_s16, %s785_s17, %s786_s19, %s787_s8  }
 0x152 PF: > { %p577_p0 = scmp.ge.s32.totalorder %s777_s14, 2  ;;  %s388_s15 = sand.u32 1, %s757_s9  }
 0x153   : > { %p1046_p10 = scmp.ne.s32.totalorder %s1037_s21, 0  ;;  %s389_s5 = scalar_lea.sflag [#allocation5], %s388_s15 }
 0x155   : > { %p571_p3 = pnand %p577_p0, %p1046_p10 }
 0x157   : > { %752 = dma.done.wait (!%p571_p3), %s389_s5, 512  }
 0x158   : > { %754 = vsyncadd (!%p571_p3), %s389_s5, 4294966784  ;;  %s19_s14 = sadd.s32 1, %s777_s14   ;;  %s1047_s9 = smov %s761_s10 }
 0x159   : > { %p16_p6 = scmp.ge.s32.totalorder %s19_s14, 5   ;;  %s1048_s10 = smov %s765_s11 }
 0x15a   : > { %s1049_s11 = smov %s916_s7  ;;  %s1050_s12 = smov %s773_s13 }
 0x15b   : > { %s1051_s13 = smov %s1053_s27  ;;  %18 = sbr.rel (!%p16_p6) target bundleno = 7 (0x7), region = 87 }
 0x162   :  { %394 = vsyncpa [#allocation4], 1 }
 0x163   :  { %396 = vsyncpa [#allocation4 + $0x1], 1 }
 0x164   :  { %397 = vsyncpa [#allocation7], 1 }
 0x165   :  { %399 = vsyncpa [#allocation7 + $0x1], 1 }
 0x166   :  { %400 = vsyncpa [#allocation5], 1 }
 0x167   :  { %402 = vsyncpa [#allocation5 + $0x1], 1 }

</bundles_post_ra>
